<compile_context>
chip_gen: v5e
topology: v5e:2x2
jax: 0.10.0
libtpu: 0.0.40
codegen_flags: <defaults>
</compile_context>

<pallas_src>
import functools

import jax
import jax.numpy as jnp
from jax.experimental import pallas as pl
from jax.experimental.pallas import tpu as pltpu

SMOOTH = 1.0
IGNORE_INDEX = 255
TARGET_BLOCK_BYTES = 1 << 20    # ~1 MiB logits block per grid step (HBM roofline)
MAX_TILE_P = 32768              # lane cap per block (still tiny vs VMEM everywhere)
CHUNK_BUDGET_BYTES = 64 << 10   # per (C, chunk) f32 intermediate inside the kernel


def _ce_dice_kernel(logits_ref, labels_ref, out_ref, *, total_p, tile_p, chunk,
                    n_chunks, tiles_per_split, ignore_index, mask_oob):
    """Grid = (N, splits, tiles_per_split).

    out_ref is a per-(batch, split) resident (1, 1, 3, tile_p) f32 accumulator:
      row 0 = softmax prob at target class, row 1 = keep mask, row 2 = per-pixel CE.
    Compute is chunked over `chunk`-lane sub-slices to bound vreg live ranges.
    """
    s_idx = pl.program_id(1)
    p_idx = pl.program_id(2)
    # Global pixel offset of this tile (UNclamped; fully out-of-range tiles are
    # DMA-clamped in the index_map and masked to zero contribution here).
    tile_start = (s_idx * tiles_per_split + p_idx) * tile_p

    @pl.when(p_idx == 0)
    def _init():
        out_ref[...] = jnp.zeros_like(out_ref)

    C = logits_ref.shape[1]
    # Loop-invariant iotas hoisted out of the chunk loop (JAX does not CSE them).
    ch = jax.lax.broadcasted_iota(jnp.int32, (C, chunk), 0)
    lane = None
    if mask_oob:
        lane = jax.lax.broadcasted_iota(jnp.int32, (1, chunk), 1)

    def process(off):
        sl = pl.ds(off, chunk)
        x = logits_ref[0, :, sl].astype(jnp.float32)       # (C, chunk) upcast per chunk
        labels = labels_ref[0, :, sl]                      # (1, chunk) i32

        keep = labels != ignore_index                      # (1, chunk) bool
        if mask_oob:
            keep = jnp.logical_and(keep, (tile_start + off + lane) < total_p)
        keep_f = keep.astype(jnp.float32)

        # Numerically stable softmax pieces over the channel (sublane) axis.
        # No clamp of stale tail logits: garbage lanes may produce inf/NaN here,
        # but lanes are independent and the outputs below are SELECTED by `keep`.
        m = jnp.max(x, axis=0, keepdims=True)              # (1, chunk)
        xm = x - m
        e = jnp.exp(xm)
        se = jnp.sum(e, axis=0, keepdims=True)             # (1, chunk)

        # Shifted logit at the target class: compare + select + reduce (no one-hot
        # cast/mul).  Ignored pixels have labels >= C -> no match -> 0.
        xm_t = jnp.sum(jnp.where(ch == labels, xm, 0.0), axis=0, keepdims=True)

        # Selects (not multiplies) so stale-NaN tail lanes cannot poison the sums.
        p_t = jnp.where(keep, jnp.exp(xm_t) / se, 0.0)     # softmax prob at target
        ce_pix = jnp.where(keep, jnp.log(se) - xm_t, 0.0)  # -log_softmax at target

        # Three separate row accumulations (no concatenate / sublane relayout).
        out_ref[0, 0, 0:1, sl] += p_t
        out_ref[0, 0, 1:2, sl] += keep_f
        out_ref[0, 0, 2:3, sl] += ce_pix

    if n_chunks == 1:
        process(0)
    else:
        def body(i, carry):
            process(pl.multiple_of(i * chunk, 128))
            return carry
        jax.lax.fori_loop(0, n_chunks, body, 0, unroll=True)


def ce_dice_loss(logits_nchw, target_nhw, *, smooth=SMOOTH, ignore_index=IGNORE_INDEX):
    """logits_nchw: (N, C, H, W) float (any float dtype); target_nhw: (N, H, W) int."""
    N, C, H, W = logits_nchw.shape
    P = H * W
    dtype_bytes = jnp.dtype(logits_nchw.dtype).itemsize

    # In-kernel sub-chunk width: keep each (C, chunk) f32 intermediate <= ~64 KiB
    # so live ranges fit the 256 KiB vreg file (128 <= chunk <= 1024, mult of 128).
    chunk = ((CHUNK_BUDGET_BYTES // (C * 4)) // 128) * 128
    chunk = max(128, min(1024, chunk))

    if P <= chunk:
        # Whole pixel axis in one block/chunk (block dim == full dim, always legal).
        tile_p = P
        chunk = P
        n_chunks = 1
    else:
        # Lane tile targeting ~1 MiB of logits per block, multiple of `chunk`,
        # never grossly larger than the image itself.
        lanes = max(chunk, TARGET_BLOCK_BYTES // (C * dtype_bytes))
        tile_p = min(MAX_TILE_P, (lanes // chunk) * chunk, pl.cdiv(P, chunk) * chunk)
        tile_p = max(tile_p, chunk)
        n_chunks = tile_p // chunk

    n_ptiles = pl.cdiv(P, tile_p)
    # v7x megacore: if the batch axis alone cannot split evenly over 2 TensorCores
    # (N odd, incl. N=1) and there are >=2 tiles, add a parallel pixel-split axis.
    splits = 2 if (n_ptiles >= 2 and N % 2 == 1) else 1
    tiles_per_split = pl.cdiv(n_ptiles, splits)
    mask_oob = (splits * tiles_per_split * tile_p) != P   # ragged or clamped tiles exist

    logits = logits_nchw.reshape(N, C, P)                  # native dtype, no upcast copy
    labels = target_nhw.reshape(N, 1, P).astype(jnp.int32)

    kernel = functools.partial(
        _ce_dice_kernel, total_p=P, tile_p=tile_p, chunk=chunk, n_chunks=n_chunks,
        tiles_per_split=tiles_per_split, ignore_index=int(ignore_index),
        mask_oob=mask_oob)

    last_tile = n_ptiles - 1

    def in_tile(n, s, p):
        # Clamp fully out-of-range tiles (odd tile count split over 2) to the last
        # valid tile; the kernel masks their contribution to zero.
        return (n, 0, jnp.minimum(s * tiles_per_split + p, last_tile))

    partials = pl.pallas_call(
        kernel,
        out_shape=jax.ShapeDtypeStruct((N, splits, 3, tile_p), jnp.float32),
        grid_spec=pltpu.PrefetchScalarGridSpec(
            num_scalar_prefetch=0,
            grid=(N, splits, tiles_per_split),
            in_specs=[
                pl.BlockSpec((1, C, tile_p), in_tile),
                pl.BlockSpec((1, 1, tile_p), in_tile),
            ],
            out_specs=pl.BlockSpec((1, 1, 3, tile_p), lambda n, s, p: (n, s, 0, 0)),
        ),
        compiler_params=pltpu.CompilerParams(
            dimension_semantics=("parallel", "parallel", "arbitrary")),
    )(logits, labels)

    # Final cross-lane reductions + scalar math in plain JAX (once, negligible).
    sums = jnp.sum(partials, axis=(0, 1, 3))              # (3,)
    inter, n_keep, ce_sum = sums[0], sums[1], sums[2]
    ce = ce_sum / n_keep   # NaN if every pixel is ignored (matches PyTorch)
    # sum(probs*keep) == sum(onehot*keep) == n_keep (both are keep-masked in the
    # reference DiceLoss), so the Dice denominator is exactly 2*n_keep.
    dice = 1.0 - (2.0 * inter + smooth) / (2.0 * n_keep + smooth)
    return ce + dice


def _ce_dice_ref(logits_nchw, target_nhw, smooth=SMOOTH, ignore_index=IGNORE_INDEX):
    """Pure-JAX reference mirroring the PyTorch CE_DiceLoss forward."""
    N, C, H, W = logits_nchw.shape
    x = logits_nchw.astype(jnp.float32)
    keep = target_nhw != ignore_index                      # (N,H,W) bool
    keep_f = keep[:, None].astype(jnp.float32)             # (N,1,H,W)
    safe_t = jnp.where(keep, target_nhw, 0)

    # Cross entropy (reduction='mean', ignore_index).
    logp = jax.nn.log_softmax(x, axis=1)
    logp_t = jnp.take_along_axis(logp, safe_t[:, None], axis=1)[:, 0]
    ce = -jnp.sum(jnp.where(keep, logp_t, 0.0)) / jnp.sum(keep)

    # Dice.
    probs = jax.nn.softmax(x, axis=1) * keep_f
    onehot = jax.nn.one_hot(safe_t, C, axis=1, dtype=jnp.float32) * keep_f
    inter = jnp.sum(probs * onehot)
    dice = 1.0 - (2.0 * inter + smooth) / (jnp.sum(probs) + jnp.sum(onehot) + smooth)
    return ce + dice


if __name__ == "__main__":
    key = jax.random.PRNGKey(0)
    keys = jax.random.split(key, 9)

    # Case 1: f32 logits, whole image fits in one lane tile.
    N, C, H, W = 2, 4, 16, 16
    logits = jax.random.normal(keys[0], (N, C, H, W), dtype=jnp.float32)
    target = jax.random.randint(keys[1], (N, H, W), 0, C, dtype=jnp.int32)
    target = jnp.where(jax.random.uniform(keys[2], (N, H, W)) < 0.1, IGNORE_INDEX, target)
    loss = jax.block_until_ready(ce_dice_loss(logits, target))
    ref = jax.block_until_ready(_ce_dice_ref(logits, target))
    assert jnp.allclose(loss, ref, atol=1e-5, rtol=1e-5), (loss, ref)

    # Case 2: bf16 logits, pixel count not a multiple of 128 (full-dim tile path).
    N2, C2, H2, W2 = 2, 5, 20, 18
    logits2 = jax.random.normal(keys[3], (N2, C2, H2, W2),
                                dtype=jnp.float32).astype(jnp.bfloat16)
    target2 = jax.random.randint(keys[4], (N2, H2, W2), 0, C2, dtype=jnp.int32)
    target2 = jnp.where(jax.random.uniform(keys[5], (N2, H2, W2)) < 0.1,
                        IGNORE_INDEX, target2)
    loss2 = jax.block_until_ready(ce_dice_loss(logits2, target2))
    ref2 = jax.block_until_ready(_ce_dice_ref(logits2, target2))
    assert jnp.allclose(loss2, ref2, atol=1e-5, rtol=1e-5), (loss2, ref2)

    # Case 3: bf16, N=1, ragged image large enough for multiple tiles -> exercises
    # multi-step accumulation, the in-kernel chunk loop, the megacore pixel split
    # and its clamped+masked tail tile.
    N3, C3, H3, W3 = 1, 4, 272, 250
    logits3 = jax.random.normal(keys[6], (N3, C3, H3, W3),
                                dtype=jnp.float32).astype(jnp.bfloat16)
    target3 = jax.random.randint(keys[7], (N3, H3, W3), 0, C3, dtype=jnp.int32)
    target3 = jnp.where(jax.random.uniform(keys[8], (N3, H3, W3)) < 0.1,
                        IGNORE_INDEX, target3)
    loss3 = jax.block_until_ready(ce_dice_loss(logits3, target3))
    ref3 = jax.block_until_ready(_ce_dice_ref(logits3, target3))
    assert jnp.allclose(loss3, ref3, atol=5e-5, rtol=5e-5), (loss3, ref3)

    print("KERNEL_OK")
</pallas_src>

<mosaic_0001>
module attributes {stable_mosaic.version = 11 : i64} {
  func.func @_ce_dice_kernel(%arg0: i32, %arg1: i32, %arg2: i32, %arg3: memref<1x4x256xf32, #tpu.memory_space<vmem>>, %arg4: memref<1x1x256xi32, #tpu.memory_space<vmem>>, %arg5: memref<1x1x3x256xf32, #tpu.memory_space<vmem>>) attributes {dimension_semantics = [#tpu.dimension_semantics<parallel>, #tpu.dimension_semantics<parallel>, #tpu.dimension_semantics<arbitrary>], iteration_bounds = array<i64: 2, 1, 1>, scalar_prefetch = 0 : i64, scratch_operands = 0 : i64, tpu.core_type = #tpu.core_type<tc>, window_params = [{transform_indices = @transform_0, window_bounds = array<i64: 1, 4, 256>}, {transform_indices = @transform_1, window_bounds = array<i64: 1, 1, 256>}, {transform_indices = @transform_2, window_bounds = array<i64: 1, 1, 3, 256>}]} {
    %c0_i32 = arith.constant 0 : i32
    %0 = arith.cmpi eq, %arg2, %c0_i32 : i32
    %1 = arith.extui %0 : i1 to i32
    %c0_i32_0 = arith.constant 0 : i32
    %2 = arith.cmpi ne, %1, %c0_i32_0 : i32
    scf.if %2 {
      %cst_33 = arith.constant 0.000000e+00 : f32
      %51 = vector.broadcast %cst_33 : f32 to vector<1x1x3x256xf32>
      %c0_34 = arith.constant 0 : index
      %c0_35 = arith.constant 0 : index
      %c0_36 = arith.constant 0 : index
      %c0_37 = arith.constant 0 : index
      %52 = vector.load %arg5[%c0_34, %c0_35, %c0_36, %c0_37] : memref<1x1x3x256xf32, #tpu.memory_space<vmem>>, vector<1x1x3x256xf32>
      tpu.vector_store %arg5[%c0_34, %c0_35, %c0_36, %c0_37], %51 {strides = array<i32>} : memref<1x1x3x256xf32, #tpu.memory_space<vmem>>, vector<1x1x3x256xf32>,
    } else {
    }
    %3 = tpu.iota {dimensions = array<i32: 0>} : vector<4x256xi32>
    %c0 = arith.constant 0 : index
    %c0_1 = arith.constant 0 : index
    %c0_2 = arith.constant 0 : index
    %4 = vector.load %arg3[%c0, %c0_1, %c0_2] : memref<1x4x256xf32, #tpu.memory_space<vmem>>, vector<1x4x256xf32>
    %5 = vector.shape_cast %4 : vector<1x4x256xf32> to vector<4x256xf32>
    %c0_3 = arith.constant 0 : index
    %c0_4 = arith.constant 0 : index
    %c0_5 = arith.constant 0 : index
    %6 = vector.load %arg4[%c0_3, %c0_4, %c0_5] : memref<1x1x256xi32, #tpu.memory_space<vmem>>, vector<1x1x256xi32>
    %7 = vector.shape_cast %6 : vector<1x1x256xi32> to vector<1x256xi32>
    %c255_i32 = arith.constant 255 : i32
    %8 = vector.broadcast %c255_i32 : i32 to vector<1x256xi32>
    %9 = arith.cmpi ne, %7, %8 : vector<1x256xi32>
    %10 = arith.extui %9 : vector<1x256xi1> to vector<1x256xi32>
    %11 = arith.sitofp %10 : vector<1x256xi32> to vector<1x256xf32>
    %cst = arith.constant dense<0xFF800000> : vector<256xf32>
    %12 = vector.multi_reduction <maximumf>, %5, %cst [0] : vector<4x256xf32> to vector<256xf32>
    %13 = vector.shape_cast %12 : vector<256xf32> to vector<1x256xf32>
    %14 = vector.broadcast %13 : vector<1x256xf32> to vector<4x256xf32>
    %15 = arith.subf %5, %14 : vector<4x256xf32>
    %16 = math.exp %15 : vector<4x256xf32>
    %cst_6 = arith.constant dense<0.000000e+00> : vector<256xf32>
    %17 = vector.multi_reduction <add>, %16, %cst_6 [0] : vector<4x256xf32> to vector<256xf32>
    %18 = vector.shape_cast %17 : vector<256xf32> to vector<1x256xf32>
    %19 = vector.broadcast %7 : vector<1x256xi32> to vector<4x256xi32>
    %20 = arith.cmpi eq, %3, %19 : vector<4x256xi32>
    %cst_7 = arith.constant 0.000000e+00 : f32
    %21 = vector.broadcast %cst_7 : f32 to vector<4x256xf32>
    %22 = arith.select %20, %15, %21 : vector<4x256xi1>, vector<4x256xf32>
    %cst_8 = arith.constant dense<0.000000e+00> : vector<256xf32>
    %23 = vector.multi_reduction <add>, %22, %cst_8 [0] : vector<4x256xf32> to vector<256xf32>
    %24 = vector.shape_cast %23 : vector<256xf32> to vector<1x256xf32>
    %25 = math.exp %24 : vector<1x256xf32>
    %26 = arith.divf %25, %18 : vector<1x256xf32>
    %cst_9 = arith.constant 0.000000e+00 : f32
    %27 = vector.broadcast %cst_9 : f32 to vector<1x256xf32>
    %28 = arith.select %9, %26, %27 : vector<1x256xi1>, vector<1x256xf32>
    %29 = math.log %18 : vector<1x256xf32>
    %30 = arith.subf %29, %24 : vector<1x256xf32>
    %cst_10 = arith.constant 0.000000e+00 : f32
    %31 = vector.broadcast %cst_10 : f32 to vector<1x256xf32>
    %32 = arith.select %9, %30, %31 : vector<1x256xi1>, vector<1x256xf32>
    %c0_11 = arith.constant 0 : index
    %c0_12 = arith.constant 0 : index
    %c0_13 = arith.constant 0 : index
    %c0_14 = arith.constant 0 : index
    %33 = vector.load %arg5[%c0_11, %c0_12, %c0_13, %c0_14] : memref<1x1x3x256xf32, #tpu.memory_space<vmem>>, vector<1x1x1x256xf32>
    %34 = vector.shape_cast %33 : vector<1x1x1x256xf32> to vector<1x256xf32>
    %35 = arith.addf %34, %28 : vector<1x256xf32>
    %c0_15 = arith.constant 0 : index
    %c0_16 = arith.constant 0 : index
    %c0_17 = arith.constant 0 : index
    %c0_18 = arith.constant 0 : index
    %36 = vector.load %arg5[%c0_15, %c0_16, %c0_17, %c0_18] : memref<1x1x3x256xf32, #tpu.memory_space<vmem>>, vector<1x1x1x256xf32>
    %37 = vector.shape_cast %36 : vector<1x1x1x256xf32> to vector<1x256xf32>
    %38 = vector.shape_cast %35 : vector<1x256xf32> to vector<1x1x1x256xf32>
    tpu.vector_store %arg5[%c0_15, %c0_16, %c0_17, %c0_18], %38 {strides = array<i32>} : memref<1x1x3x256xf32, #tpu.memory_space<vmem>>, vector<1x1x1x256xf32>,
    %c0_19 = arith.constant 0 : index
    %c0_20 = arith.constant 0 : index
    %c1 = arith.constant 1 : index
    %c0_21 = arith.constant 0 : index
    %39 = vector.load %arg5[%c0_19, %c0_20, %c1, %c0_21] : memref<1x1x3x256xf32, #tpu.memory_space<vmem>>, vector<1x1x1x256xf32>
    %40 = vector.shape_cast %39 : vector<1x1x1x256xf32> to vector<1x256xf32>
    %41 = arith.addf %40, %11 : vector<1x256xf32>
    %c0_22 = arith.constant 0 : index
    %c0_23 = arith.constant 0 : index
    %c1_24 = arith.constant 1 : index
    %c0_25 = arith.constant 0 : index
    %42 = vector.load %arg5[%c0_22, %c0_23, %c1_24, %c0_25] : memref<1x1x3x256xf32, #tpu.memory_space<vmem>>, vector<1x1x1x256xf32>
    %43 = vector.shape_cast %42 : vector<1x1x1x256xf32> to vector<1x256xf32>
    %44 = vector.shape_cast %41 : vector<1x256xf32> to vector<1x1x1x256xf32>
    tpu.vector_store %arg5[%c0_22, %c0_23, %c1_24, %c0_25], %44 {strides = array<i32>} : memref<1x1x3x256xf32, #tpu.memory_space<vmem>>, vector<1x1x1x256xf32>,
    %c0_26 = arith.constant 0 : index
    %c0_27 = arith.constant 0 : index
    %c2 = arith.constant 2 : index
    %c0_28 = arith.constant 0 : index
    %45 = vector.load %arg5[%c0_26, %c0_27, %c2, %c0_28] : memref<1x1x3x256xf32, #tpu.memory_space<vmem>>, vector<1x1x1x256xf32>
    %46 = vector.shape_cast %45 : vector<1x1x1x256xf32> to vector<1x256xf32>
    %47 = arith.addf %46, %32 : vector<1x256xf32>
    %c0_29 = arith.constant 0 : index
    %c0_30 = arith.constant 0 : index
    %c2_31 = arith.constant 2 : index
    %c0_32 = arith.constant 0 : index
    %48 = vector.load %arg5[%c0_29, %c0_30, %c2_31, %c0_32] : memref<1x1x3x256xf32, #tpu.memory_space<vmem>>, vector<1x1x1x256xf32>
    %49 = vector.shape_cast %48 : vector<1x1x1x256xf32> to vector<1x256xf32>
    %50 = vector.shape_cast %47 : vector<1x256xf32> to vector<1x1x1x256xf32>
    tpu.vector_store %arg5[%c0_29, %c0_30, %c2_31, %c0_32], %50 {strides = array<i32>} : memref<1x1x3x256xf32, #tpu.memory_space<vmem>>, vector<1x1x1x256xf32>,
    return
  }
  func.func @transform_0(%arg0: i32, %arg1: i32, %arg2: i32) -> (i32, i32, i32) {
    %c1_i32 = arith.constant 1 : i32
    %0 = arith.muli %arg1, %c1_i32 : i32
    %1 = arith.addi %0, %arg2 : i32
    %c0_i32 = arith.constant 0 : i32
    %2 = arith.minsi %1, %c0_i32 : i32
    %c0_i32_0 = arith.constant 0 : i32
    %c0_i32_1 = arith.constant 0 : i32
    return %arg0, %c0_i32_0, %2 : i32, i32, i32
  }
  func.func @transform_1(%arg0: i32, %arg1: i32, %arg2: i32) -> (i32, i32, i32) {
    %c1_i32 = arith.constant 1 : i32
    %0 = arith.muli %arg1, %c1_i32 : i32
    %1 = arith.addi %0, %arg2 : i32
    %c0_i32 = arith.constant 0 : i32
    %2 = arith.minsi %1, %c0_i32 : i32
    %c0_i32_0 = arith.constant 0 : i32
    %c0_i32_1 = arith.constant 0 : i32
    return %arg0, %c0_i32_0, %2 : i32, i32, i32
  }
  func.func @transform_2(%arg0: i32, %arg1: i32, %arg2: i32) -> (i32, i32, i32, i32) {
    %c0_i32 = arith.constant 0 : i32
    %c0_i32_0 = arith.constant 0 : i32
    %c0_i32_1 = arith.constant 0 : i32
    return %arg0, %arg1, %c0_i32, %c0_i32_0 : i32, i32, i32, i32
  }
}

</mosaic_0001>

<bundles_post_ra>
// kernel: tpu_custom_call.1
= control target key start
LH: loop header
LB: loop body
LE: loop exit
PB: predicated region body
PF: predicated region fallthrough
CT: control target
= control target key end

     0   :  { %7 = vsyncpa [#allocation3], 0  ;;  %s930_s0 = inlined_call_operand.hbm [shape: f32[2,4,256], index: 0, kind: input, shape index: {}]   ;;  %s931_s1 = inlined_call_operand.hbm [shape: s32[2,1,256], index: 1, kind: input, shape index: {}]   ;;  %s932_s2 = inlined_call_operand.vmem [shape: f32[2,1,3,256], index: 2, kind: output, shape index: {}]  }
   0x1   :  { %9 = vsyncpa [#allocation3 + $0x1], 0 }
   0x2   :  { %10 = vsyncpa [#allocation5], 0 }
   0x3   :  { %12 = vsyncpa [#allocation5 + $0x1], 0  ;;  %s777_s9 = smov 0   ;;  %s779_s10 = smov 0  }
   0x4   :  { %s781_s11 = smov 0   ;;  %s783_s12 = smov 0  }
   0x5   :  { %s785_s13 = smov 0   ;;  %s787_s14 = smov 0  }
   0x6 LB: > { %s547_s15 = sadd.s32 4294967295, %s759_s14   ;;  %s37_s16 = sadd.s32 1, %s755_s13  ;;  %s759_s14 = sphi %s787_s14, %s18_s14   ;;  %s755_s13 = sphi %s785_s13, %s944_s13   ;;  %s751_s12 = sphi %s783_s12, %s943_s12   ;;  %s747_s11 = sphi %s781_s11, %s942_s11   ;;  %s743_s10 = sphi %s779_s10, %s941_s10   ;;  %s739_s9 = sphi %s777_s9, %s940_s9  }
   0x7   : > { %p39_p0 = scmp.ge.s32.totalorder %s37_s16, 2  ;;  %s52_s17 = sadd.s32 1, %s747_s11 }
   0x8   : > { %p59_p1 = scmp.ne.s32.totalorder %s747_s11, %s743_s10  ;;  %p60_p2 = scmp.eq.s32.totalorder %s759_s14, 0 }
   0x9   : > { %s946_s16 = smov (%p39_p0, %s37_s16), 0  ;;  %p65_p4 = scmp.ne.s32.totalorder %s743_s10, %s739_s9 }
   0xa   : > { %p813_p3 = por %p60_p2, %p59_p1  ;;  %s47_s19 = ssub.s32 %s755_s13, %s946_s16 }
   0xb   : > { %p66_p5 = scmp.eq.s32.totalorder %s547_s15, 0  ;;  %p50_p6 = scmp.eq.s32.totalorder %s47_s19, 0 }
   0xc   : > { %p581_p8 = scmp.lt.s32.totalorder %s759_s14, 2  ;;  %s151_s22 = sand.u32 1, %s747_s11  }
   0xd   : > { %p820_p7 = por %p66_p5, %p65_p4  ;;  %s568_s23 = sshll.u32 %s755_s13, 3 }
   0xe   : > { %s826_s21 = scalar_select %p50_p6, %s747_s11, %s52_s17  }
   0xf   : > { %s551_s24 = sshll.u32 %s151_s22, 3  ;;  %s165_s27 = scalar_lea.hbm %s930_s0, %s568_s23 }
  0x10   : > { %s167_s28 = sshll.u32 %s165_s27, 4  ;;  %s155_s29 = scalar_lea.vmem [#allocation2], %s551_s24  ;;  %s168_s28 = int_to_ptr.hbm [resolvable:$true] %s167_s28 }
  0x11   : > { %s169_s30 = sshll.u32 %s155_s29, 4  ;;  %p835_p9 = pnand %p581_p8, %p813_p3  ;;  %s170_s30 = int_to_ptr.vmem [resolvable:$true] %s169_s30 }
  0x12   : > { %p556_p10 = scmp.ge.s32.totalorder %s759_s14, 1  ;;  %p198_p11 = scmp.lt.s32.totalorder %s759_s14, 3 }
  0x13   : > { %s554_s4 = sshll.u32 %s151_s22, 1  ;;  %s152_s5 = scalar_lea.sflag [#allocation3], %s151_s22 }
  0x14   : > { %577 = dma.hbm_to_vmem [thread:$0]  (!%p835_p9), %s168_s28, 128, %s170_s30, %s152_s5  }
  0x15   : > { %p199_p12 = pnand %p556_p10, %p198_p11  ;;  %s555_s6 = sshll.u32 %s755_s13, 1 }
  0x16   : > { %s180_s7 = scalar_lea.vmem [#allocation4], %s554_s4  ;;  %s189_s17 = scalar_lea.hbm %s931_s1, %s555_s6 }
  0x17   : > { %s193_s8 = sshll.u32 %s180_s7, 4  ;;  %s191_s18 = sshll.u32 %s189_s17, 4  ;;  %s194_s8 = int_to_ptr.vmem [resolvable:$true] %s193_s8  ;;  %s192_s18 = int_to_ptr.hbm [resolvable:$true] %s191_s18 }
  0x18   : > { %s177_s19 = scalar_lea.sflag [#allocation5], %s151_s22  ;;  %202 = sbr.rel (%p199_p12) target bundleno = 118 (0x76), region = 28 }
  0x19   : > { %580 = dma.hbm_to_vmem [thread:$0]  (!%p835_p9), %s192_s18, 32, %s194_s8, %s177_s19  }
  0x1a   : > { %s204_s23 = sand.u32 (!%p199_p12), 1, %s743_s10  }
  0x1b   : > { %s557_s24 = sshll.u32 (!%p199_p12), %s204_s23, 3  ;;  %s205_s25 = scalar_lea.sflag (!%p199_p12), [#allocation3], %s204_s23 }
  0x1c   : > { %s208_s26 = scalar_lea.vmem (!%p199_p12), [#allocation2], %s557_s24 }
  0x1d   : > { %730 = dma.done.wait (%p820_p7), %s205_s25, 128  }
  0x1e   : > { %732 = vsyncadd (%p820_p7), %s205_s25, 4294967168  ;;  %s558_s27 = sshll.u32 %s204_s23, 1  ;;  %s215_s28 = scalar_lea.sflag [#allocation5], %s204_s23 }
  0x1f   : > { %s854_s29 = scalar_lea.vmem [#allocation4], %s558_s27 }
  0x20   : > { %734 = dma.done.wait (%p820_p7), %s215_s28, 32  }
  0x21   : > { %736 = vsyncadd (%p820_p7), %s215_s28, 4294967264  ;;  %v273_v0 = vld [vmem:[%s208_s26] sm:$0xff]  ;;  %vm284_vm0 = vcmask 1043456   ;;  %p257_p13 = scmp.lt.s32.totalorder %s751_s12, 1  ;;  %v761_v21 = vmov 0.0   ;;  %v271_v23 = vlaneseq  ;;  %vm390_vm10 = vcmask 1040384  }
  0x22   : > { %279 = vst [vmem:[#allocation1] ss:$2 sm:$0xff] %v273_v0  ;;  %v872_v24 = vld [vmem:[%s854_s29] sm:$0x3] }
  0x23   : > { %s948_s12 = smov (!%p257_p13, %s751_s12), 1  ;;  %v272_v29 = vshrl.u32 %v271_v23, 7  ;;  %v327_v32 = vperm.slane %v872_v24, 0  ;;  %v328_v33 = vperm.slane %v872_v24, 1  ;;  %vm275_vm1 = vcmp.ne.s32.totalorder %v872_v24, 255 }
  0x24   : > { %s569_s20 = sshll.u32 %s948_s12, 3  ;;  %v561_v36 = vsel %vm275_vm1, 1.0, %v761_v21  ;;  %vm882_vm4 = vcmp.lt.s32.totalorder %v271_v23, 256 }
  0x25   : > { %s868_s3 = scalar_lea.vmem %s932_s2, %s569_s20  ;;  %vm329_vm2 = vcmp.eq.s32.totalorder %v272_v29, %v327_v32  ;;  %vm330_vm3 = vcmp.eq.s32.totalorder %v272_v29, %v328_v33 }
  0x26   : > { %270 = vst [vmem:[%s868_s3] sm:$0x77] %v761_v21 }
  0x29   : > { %v280_v1 = vld.sshfl [vmem:[#allocation1] sm:$0xff pattern:$0x75316420]  ;;  %v281_v2 = vld.sshfl [vmem:[#allocation1 + $0x8] sm:$0xff pattern:$0x75316420] }
  0x2a   : > { %v285_v3 = vsel %vm284_vm0, %v280_v1, -inf  ;;  %v292_v4 = vsel %vm284_vm0, %v281_v2, -inf }
  0x2b   : > { %v286_v5 = vrot.slane %v285_v3, 4  ;;  %v293_v6 = vrot.slane %v292_v4, 4 }
  0x2d   : > { %v287_v7 = vmax.f32 %v285_v3, %v286_v5  ;;  %v294_v8 = vmax.f32 %v292_v4, %v293_v6  ;;  %v562_v39 = vld [vmem:[%s868_s3 + $0x1] ss:$4 sm:$0x3] }
  0x2e   : > { %v415_v44 = vadd.f32 %v562_v39, %v561_v36 }
  0x2f   : > { %v288_v9 = vrot.slane %v287_v7, 2  ;;  %v295_v10 = vrot.slane %v294_v8, 2 }
  0x30   : > { %563 = vst.msk [vmem:[%s868_s3 + $0x1] ss:$4 sm:$0x3] %vm882_vm4, %v415_v44 }
  0x31   : > { %v289_v11 = vmax.f32 %v287_v7, %v288_v9  ;;  %v296_v12 = vmax.f32 %v294_v8, %v295_v10 }
  0x33   : > { %v290_v13 = vrot.slane %v289_v11, 1  ;;  %v297_v14 = vrot.slane %v296_v12, 1 }
  0x35   : > { %v298_v15 = vmax.f32 %v296_v12, %v297_v14  ;;  %v291_v16 = vmax.f32 %v289_v11, %v290_v13 }
  0x37   : > { %v301_v17 = vrot.slane %v298_v15, 4 }
  0x39   : > { %v302_v18 = vsel %vm284_vm0, %v291_v16, %v301_v17 }
  0x3a   : > { %v304_v19 = vsub.f32 %v273_v0, %v302_v18 }
  0x3c   : > { %v305_v20 = vmul.f32 1.442695, %v304_v19 }
  0x3e   : > { %631 = vpow2.f32 %v305_v20 }
  0x44   : > { %v632_v22 = vpop.eup %631 }
  0x45   : > { %308 = vst [vmem:[#allocation1] ss:$2 sm:$0xff] %v632_v22 }
  0x4c   : > { %v309_v25 = vld.sshfl [vmem:[#allocation1] sm:$0xff pattern:$0x75316420]  ;;  %v310_v26 = vld.sshfl [vmem:[#allocation1 + $0x8] sm:$0xff pattern:$0x75316420] }
  0x4d   : > { %v313_v27 = vsel %vm284_vm0, %v309_v25, 0.0  ;;  %v320_v28 = vsel %vm284_vm0, %v310_v26, 0.0  ;;  %332 = vst [vmem:[#allocation1] ss:$2 sm:$0xff] %v304_v19 }
  0x4e   : > { %v314_v30 = vrot.slane %v313_v27, 4  ;;  %v321_v31 = vrot.slane %v320_v28, 4 }
  0x50   : > { %v315_v34 = vadd.f32 %v314_v30, %v313_v27  ;;  %v322_v35 = vadd.f32 %v321_v31, %v320_v28  ;;  %v564_v31 = vld [vmem:[%s868_s3 + $0x2] ss:$4 sm:$0x3] }
  0x52   : > { %v316_v37 = vrot.slane %v315_v34, 2  ;;  %v323_v38 = vrot.slane %v322_v35, 2 }
  0x54   : > { %v317_v40 = vadd.f32 %v316_v37, %v315_v34  ;;  %v324_v41 = vadd.f32 %v323_v38, %v322_v35  ;;  %v333_v42 = vld.sshfl [vmem:[#allocation1] sm:$0xff pattern:$0x75316420]  ;;  %v334_v43 = vld.sshfl [vmem:[#allocation1 + $0x8] sm:$0xff pattern:$0x75316420] }
  0x55   : > { %v337_v45 = vsel %vm329_vm2, %v333_v42, 0.0  ;;  %v338_v46 = vsel %vm330_vm3, %v334_v43, 0.0  ;;  %v406_v42 = vld [vmem:[%s868_s3] ss:$4 sm:$0x3] }
  0x56   : > { %v318_v48 = vrot.slane %v317_v40, 1  ;;  %v325_v49 = vrot.slane %v324_v41, 1  ;;  %v339_v50 = vsel %vm284_vm0, %v337_v45, 0.0  ;;  %v346_v51 = vsel %vm284_vm0, %v338_v46, 0.0 }
  0x57   : > { %v340_v52 = vrot.slane %v339_v50, 4  ;;  %v347_v53 = vrot.slane %v346_v51, 4 }
  0x58   : > { %v319_v54 = vadd.f32 %v318_v48, %v317_v40  ;;  %v326_v55 = vadd.f32 %v325_v49, %v324_v41 }
  0x59   : > { %v341_v56 = vadd.f32 %v340_v52, %v339_v50  ;;  %v348_v57 = vadd.f32 %v347_v53, %v346_v51 }
  0x5a   : > { %633 = vrcp.f32 %v319_v54  ;;  %v368_v11 = vand.u32 2147483648, %v319_v54  ;;  %v383_v13 = vand.u32 2147483648, %v326_v55  ;;  %v381_v18 = vand.u32 2147483647, %v326_v55 }
  0x5b   : > { %635 = vrcp.f32 %v326_v55  ;;  %v342_v58 = vrot.slane %v341_v56, 2  ;;  %v349_v59 = vrot.slane %v348_v57, 2  ;;  %vm362_vm7 = vweird.f32 %v319_v54 }
  0x5c   : > { %637 = vlog2.f32 %v319_v54  ;;  %v366_v20 = vand.u32 2147483647, %v319_v54  ;;  %vm377_vm9 = vweird.f32 %v326_v55  ;;  %v384_v26 = vor.u32 1.1754944e-38, %v383_v13 }
  0x5d   : > { %v343_v60 = vadd.f32 %v342_v58, %v341_v56  ;;  %v350_v61 = vadd.f32 %v349_v59, %v348_v57  ;;  %639 = vlog2.f32 %v326_v55  ;;  %v369_v29 = vor.u32 1.1754944e-38, %v368_v11 }
  0x5e   : > { %vm382_vm12 = vcmp.eq.f32.partialorder %v381_v18, 8.507059e+37  ;;  %vm367_vm13 = vcmp.eq.f32.partialorder %v366_v20, 8.507059e+37 }
  0x5f   : > { %v344_v62 = vrot.slane %v343_v60, 1  ;;  %v351_v63 = vrot.slane %v350_v61, 1 }
  0x60   : > { %v634_v0 = vpop.eup %633 }
  0x61   : > { %v636_v1 = vpop.eup %635  ;;  %v345_v2 = vadd.f32 %v344_v62, %v343_v60  ;;  %v352_v3 = vadd.f32 %v351_v63, %v350_v61  ;;  %v358_v4 = vmul.f32 %v634_v0, %v319_v54  ;;  %vm363_vm5 = vweird.f32 %v634_v0 }
  0x62   : > { %v373_v5 = vmul.f32 %v636_v1, %v326_v55  ;;  %v638_v6 = vpop.eup %637  ;;  %vm378_vm6 = vweird.f32 %v636_v1  ;;  %vm892_vm8 = vmor %vm362_vm7, %vm363_vm5 }
  0x63   : > { %v353_v7 = vmul.f32 1.442695, %v345_v2  ;;  %v355_v8 = vmul.f32 1.442695, %v352_v3  ;;  %v359_v9 = vsub.f32 1.0, %v358_v4  ;;  %v640_v10 = vpop.eup %639  ;;  %vm379_vm11 = vmor %vm377_vm9, %vm378_vm6 }
  0x64   : > { %v374_v12 = vsub.f32 1.0, %v373_v5  ;;  %v395_v15 = vmul.f32 0.6931472, %v638_v6  ;;  %v397_v16 = vmul.f32 0.6931472, %v640_v10 }
  0x65   : > { %641 = vpow2.f32 %v353_v7  ;;  %v360_v14 = vmul.f32 %v634_v0, %v359_v9 }
  0x66   : > { %643 = vpow2.f32 %v355_v8  ;;  %v375_v17 = vmul.f32 %v636_v1, %v374_v12  ;;  %v399_v21 = vsub.f32 %v397_v16, %v352_v3  ;;  %v398_v27 = vsub.f32 %v395_v15, %v345_v2 }
  0x67   : > { %v361_v19 = vadd.f32 %v634_v0, %v360_v14 }
  0x68   : > { %v376_v23 = vadd.f32 %v636_v1, %v375_v17  ;;  %v402_v28 = vrot.slane %v399_v21, 7 }
  0x69   : > { %v365_v25 = vsel %vm892_vm8, %v634_v0, %v361_v19 }
  0x6a   : > { %v380_v30 = vsel %vm379_vm11, %v636_v1, %v376_v23  ;;  %v403_v34 = vsel %vm390_vm10, %v398_v27, %v402_v28  ;;  %v370_v36 = vsel %vm367_vm13, %v369_v29, %v365_v25 }
  0x6b   : > { %v642_v32 = vpop.eup %641  ;;  %v385_v33 = vsel %vm382_vm12, %v384_v26, %v380_v30  ;;  %v405_v37 = vsel %vm275_vm1, %v403_v34, 0.0 }
  0x6c   : > { %v644_v35 = vpop.eup %643  ;;  %v419_v39 = vadd.f32 %v564_v31, %v405_v37  ;;  %v371_v40 = vmul.f32 %v642_v32, %v370_v36 }
  0x6d   : > { %v386_v38 = vmul.f32 %v644_v35, %v385_v33 }
  0x6e   : > { %565 = vst.msk [vmem:[%s868_s3 + $0x2] ss:$4 sm:$0x3] %vm882_vm4, %v419_v39 }
  0x6f   : > { %v389_v41 = vrot.slane %v386_v38, 7 }
  0x71   : > { %v391_v43 = vsel %vm390_vm10, %v371_v40, %v389_v41 }
  0x72   : > { %v393_v44 = vsel %vm275_vm1, %v391_v43, 0.0 }
  0x73   : > { %v407_v45 = vadd.f32 %v406_v42, %v393_v44 }
  0x75   : > { %412 = vst.msk [vmem:[%s868_s3] ss:$4 sm:$0x3] %vm882_vm4, %v407_v45 }
  0x76 PF: > { %s18_s14 = sadd.s32 1, %s759_s14   ;;  %s940_s9 = smov %s743_s10 }
  0x77   : > { %p15_p0 = scmp.ge.s32.totalorder %s18_s14, 4   ;;  %s941_s10 = smov %s747_s11 }
  0x78   : > { %s942_s11 = smov %s826_s21  ;;  %s943_s12 = smov %s755_s13 }
  0x79   : > { %s944_s13 = smov %s946_s16  ;;  %17 = sbr.rel (!%p15_p0) target bundleno = 6 (0x6), region = 87 }
  0x7e   :  { %450 = vsyncpa [#allocation3], 1 }
  0x7f   :  { %452 = vsyncpa [#allocation3 + $0x1], 1 }
  0x80   :  { %453 = vsyncpa [#allocation5], 1 }
  0x81   :  { %455 = vsyncpa [#allocation5 + $0x1], 1 }

</bundles_post_ra>
